<compile_context>
chip_gen: v7x
topology: tpu7x:2x2x1
jax: 0.10.0
libtpu: 0.0.40
codegen_flags: <defaults>
</compile_context>

<pallas_src>
import functools

import jax
import jax.numpy as jnp
from jax.experimental import pallas as pl
from jax.experimental.pallas import tpu as pltpu


def _round_up(x, m):
    return ((x + m - 1) // m) * m


# Conservative budget that fits v5e/v6e (128 MiB physical) and v7x (64 MiB).
_VMEM_BUDGET_BYTES = 48 << 20


def _fused_vmem_bytes(b_tile, v_tile, v_pad, d, cbytes):
    emb = 2 * b_tile * d * cbytes          # embeds block (double-buffered)
    w = 2 * d * v_tile * cbytes            # streamed weight tile
    bias = 2 * v_tile * 4                  # bias tile (f32)
    out = 2 * b_tile * v_pad * 4           # resident log-probs row block
    scr = 2 * b_tile * 4                   # m / l scratch
    return emb + w + bias + out + scr


def _stream_vmem_bytes(b_tile, v_tile, d, cbytes):
    emb = 2 * b_tile * d * cbytes
    w = 2 * d * v_tile * cbytes
    bias = 2 * v_tile * 4
    out = 2 * b_tile * v_tile * 4          # streamed logits tile
    lse = 2 * b_tile * 4
    scr = 2 * b_tile * 4
    return emb + w + bias + out + lse + scr


# --------------------------------------------------------------------------
# Kernels
# --------------------------------------------------------------------------
def cbow_fused_kernel(emb_ref, w_ref, b_ref, out_ref, m_scr, l_scr):
    # emb_ref : (b_tile, D)       summed context embeddings (resident over j)
    # w_ref   : (D, v_tile)       pre-transposed linear-weight tile (streamed)
    # b_ref   : (1, v_tile)       bias tile (f32; -1e30 on padded vocab cols)
    # out_ref : (b_tile, V_pad)   log-probs row block (resident over j)
    # m_scr/l_scr : (b_tile, 1)   running max / running sum (f32)
    j = pl.program_id(1)
    v_tile = w_ref.shape[1]

    @pl.when(j == 0)
    def _():
        m_scr[...] = jnp.full_like(m_scr, -jnp.inf)
        l_scr[...] = jnp.zeros_like(l_scr)

    # Bare MXU matmul (W already laid out (D, V)); f32 accumulation even for
    # bf16 operands.  Padded vocab columns have zero weights and -1e30 bias.
    logits = jnp.dot(emb_ref[...], w_ref[...],
                     preferred_element_type=jnp.float32) + b_ref[...]

    start = pl.multiple_of(j * v_tile, 128)
    out_ref[:, pl.ds(start, v_tile)] = logits

    # Online logsumexp statistics (all f32; EUP exp, XLU row-reduce).
    m_prev = m_scr[...]
    m_new = jnp.maximum(m_prev, jnp.max(logits, axis=-1, keepdims=True))
    l_scr[...] = l_scr[...] * jnp.exp(m_prev - m_new) + jnp.sum(
        jnp.exp(logits - m_new), axis=-1, keepdims=True)
    m_scr[...] = m_new

    @pl.when(j == pl.num_programs(1) - 1)
    def _():
        # Fused epilogue: log_softmax = logits - logsumexp, in place on the
        # resident row block (single HBM write of the (B, V) output).
        lse = m_scr[...] + jnp.log(l_scr[...])
        out_ref[...] = out_ref[...] - lse


def cbow_stream_kernel(emb_ref, w_ref, b_ref, logits_ref, lse_ref, m_scr, l_scr):
    # Fallback for vocabularies too large to keep a (b_tile, V_pad) f32 row
    # resident in VMEM: stream logits tiles, emit lse, wrapper subtracts.
    j = pl.program_id(1)

    @pl.when(j == 0)
    def _():
        m_scr[...] = jnp.full_like(m_scr, -jnp.inf)
        l_scr[...] = jnp.zeros_like(l_scr)

    logits = jnp.dot(emb_ref[...], w_ref[...],
                     preferred_element_type=jnp.float32) + b_ref[...]
    logits_ref[...] = logits

    m_prev = m_scr[...]
    m_new = jnp.maximum(m_prev, jnp.max(logits, axis=-1, keepdims=True))
    l_scr[...] = l_scr[...] * jnp.exp(m_prev - m_new) + jnp.sum(
        jnp.exp(logits - m_new), axis=-1, keepdims=True)
    m_scr[...] = m_new

    @pl.when(j == pl.num_programs(1) - 1)
    def _():
        lse_ref[...] = m_scr[...] + jnp.log(l_scr[...])


# --------------------------------------------------------------------------
# Wrapper
# --------------------------------------------------------------------------
def prepare_cbow_params(emb_table, w, b, *, v_tile=2048, compute_dtype=None):
    """One-time parameter prep (hoisted out of the per-forward jitted path).

    Pads + transposes the linear weight to (D, V_pad) in the compute dtype and
    pads the bias to (1, V_pad) with -1e30 on padded vocab columns so they
    never affect max/logsumexp.
    """
    V, D = emb_table.shape
    assert w.shape == (V, D) and b.shape == (V,)
    if compute_dtype is None:
        compute_dtype = w.dtype
    v_tile = max(128, _round_up(min(int(v_tile), _round_up(V, 128)), 128))
    V_pad = _round_up(V, v_tile)
    w_t = jnp.zeros((D, V_pad), compute_dtype).at[:, :V].set(
        w.astype(compute_dtype).T)
    b_pad = jnp.full((1, V_pad), -1e30, dtype=jnp.float32).at[0, :V].set(
        b.astype(jnp.float32))
    return dict(emb_table=jnp.asarray(emb_table).astype(compute_dtype),
                w_t=w_t, bias=b_pad, vocab_size=V, v_tile=v_tile)


@functools.partial(
    jax.jit,
    static_argnames=("vocab_size", "v_tile", "b_tile_max", "fuse_epilogue"))
def cbow_forward(inputs, emb_table, w_t, bias, *, vocab_size, v_tile,
                 b_tile_max=256, fuse_epilogue=None):
    """inputs: (B, C) int32 indices. Returns (B, V) float32 log-probs."""
    B, _ = inputs.shape
    D, V_pad = w_t.shape
    V = vocab_size
    assert V_pad % v_tile == 0, "v_tile must divide the padded vocab"
    compute_dtype = w_t.dtype
    cbytes = jnp.dtype(compute_dtype).itemsize

    # Context gather + sum outside the kernel: B*C*D elements of work instead
    # of a dense one-hot matmul over the embedding table.
    embeds = jnp.sum(jnp.take(emb_table, inputs, axis=0), axis=1)
    embeds = embeds.astype(compute_dtype)

    # Batch tiling: 16 sublanes for packed (bf16) operands, 8 for f32.
    sublane = 16 if cbytes < 4 else 8
    if B <= b_tile_max:
        b_tile = _round_up(B, sublane)
    else:
        b_tile = _round_up(b_tile_max, sublane)

    # Gate the resident-logits fusion on a conservative VMEM budget
    # (v7x: 64 MiB physical).  Shrink b_tile before falling back.
    use_fused = fuse_epilogue
    if use_fused is None:
        bt = b_tile
        while (_fused_vmem_bytes(bt, v_tile, V_pad, D, cbytes)
               > _VMEM_BUDGET_BYTES and bt > sublane):
            bt = max(sublane, _round_up(bt // 2, sublane))
        if _fused_vmem_bytes(bt, v_tile, V_pad, D, cbytes) <= _VMEM_BUDGET_BYTES:
            use_fused = True
            b_tile = bt
        else:
            use_fused = False

    B_pad = _round_up(B, b_tile)
    embeds_p = jnp.zeros((B_pad, D), compute_dtype).at[:B].set(embeds)
    grid = (B_pad // b_tile, V_pad // v_tile)

    vmem_est = (_fused_vmem_bytes(b_tile, v_tile, V_pad, D, cbytes) if use_fused
                else _stream_vmem_bytes(b_tile, v_tile, D, cbytes))
    vmem_limit = int(min(max(vmem_est + (8 << 20), 32 << 20), 56 << 20))
    cparams = pltpu.CompilerParams(
        dimension_semantics=("parallel", "arbitrary"),
        vmem_limit_bytes=vmem_limit)

    in_specs = [
        pl.BlockSpec((b_tile, D), lambda i, j: (i, 0)),   # embeds (resident over j)
        pl.BlockSpec((D, v_tile), lambda i, j: (0, j)),   # W tile (pre-transposed)
        pl.BlockSpec((1, v_tile), lambda i, j: (0, j)),   # bias tile
    ]
    scratch = [pltpu.VMEM((b_tile, 1), jnp.float32),      # running max
               pltpu.VMEM((b_tile, 1), jnp.float32)]      # running sum

    if use_fused:
        out = pl.pallas_call(
            cbow_fused_kernel,
            out_shape=jax.ShapeDtypeStruct((B_pad, V_pad), jnp.float32),
            grid_spec=pltpu.PrefetchScalarGridSpec(
                num_scalar_prefetch=0,
                grid=grid,
                in_specs=in_specs,
                out_specs=pl.BlockSpec((b_tile, V_pad), lambda i, j: (i, 0)),
                scratch_shapes=scratch),
            compiler_params=cparams,
        )(embeds_p, w_t, bias)
        return out[:B, :V]

    logits, lse = pl.pallas_call(
        cbow_stream_kernel,
        out_shape=(jax.ShapeDtypeStruct((B_pad, V_pad), jnp.float32),
                   jax.ShapeDtypeStruct((B_pad, 1), jnp.float32)),
        grid_spec=pltpu.PrefetchScalarGridSpec(
            num_scalar_prefetch=0,
            grid=grid,
            in_specs=in_specs,
            out_specs=[pl.BlockSpec((b_tile, v_tile), lambda i, j: (i, j)),
                       pl.BlockSpec((b_tile, 1), lambda i, j: (i, 0))],
            scratch_shapes=scratch),
        compiler_params=cparams,
    )(embeds_p, w_t, bias)
    # Cheap elementwise epilogue only on the fallback path.
    return logits[:B, :V] - lse[:B]


# --------------------------------------------------------------------------
# Self-test
# --------------------------------------------------------------------------
if __name__ == "__main__":
    # Small, deterministic shapes.  V deliberately not a multiple of 128 so
    # the padding/masking path is exercised.
    VOCAB = 1000       # vocab_size
    EMB_DIM = 128      # embedding_dim
    BATCH = 8
    CONTEXT = 4

    key = jax.random.PRNGKey(0)
    k_emb, k_w, k_b, k_in = jax.random.split(key, 4)

    emb_table = jax.random.normal(k_emb, (VOCAB, EMB_DIM), dtype=jnp.float32) * 0.1
    w = jax.random.normal(k_w, (VOCAB, EMB_DIM), dtype=jnp.float32) * 0.1
    b = jax.random.normal(k_b, (VOCAB,), dtype=jnp.float32) * 0.1
    inputs = jax.random.randint(k_in, (BATCH, CONTEXT), 0, VOCAB, dtype=jnp.int32)

    # Reference (plain JAX) matching the PyTorch module.
    embeds_ref = jnp.sum(emb_table[inputs], axis=1)            # (B, D)
    ref = jax.nn.log_softmax(embeds_ref @ w.T + b, axis=1)     # (B, V)

    def run(params, **kw):
        out = cbow_forward(inputs, params["emb_table"], params["w_t"],
                           params["bias"], vocab_size=params["vocab_size"],
                           v_tile=params["v_tile"], **kw)
        return jax.block_until_ready(out)

    # 1) f32, small vocab tile -> 4 vocab tiles: exercises the online lse and
    #    the dynamic pl.ds stores of the fused epilogue.
    p_small = prepare_cbow_params(emb_table, w, b, v_tile=256)
    out1 = run(p_small)
    assert out1.shape == (BATCH, VOCAB)
    assert jnp.allclose(out1, ref, atol=1e-4, rtol=1e-4)

    # 2) f32, default (large) vocab tile -> single vocab tile per grid step.
    p_big = prepare_cbow_params(emb_table, w, b)   # v_tile clamps to V_pad=1024
    out2 = run(p_big)
    assert jnp.allclose(out2, ref, atol=1e-4, rtol=1e-4)

    # 3) streaming fallback path (what very large vocabularies use on v7x).
    out3 = run(p_small, fuse_epilogue=False)
    assert jnp.allclose(out3, ref, atol=1e-4, rtol=1e-4)

    # 4) bf16 weight storage (recommended on all generations: W-stream bound);
    #    f32 MXU accumulation and f32 softmax math, 16-sublane batch tile.
    p_bf16 = prepare_cbow_params(emb_table.astype(jnp.bfloat16),
                                 w.astype(jnp.bfloat16), b, v_tile=256)
    out4 = run(p_bf16)
    assert jnp.allclose(out4, ref, atol=3e-2, rtol=3e-2)

    print("KERNEL_OK")
</pallas_src>

<mosaic_0001>
module attributes {stable_mosaic.version = 11 : i64} {
  func.func @cbow_fused_kernel(%arg0: i32, %arg1: i32, %arg2: memref<8x128xf32, #tpu.memory_space<vmem>>, %arg3: memref<128x256xf32, #tpu.memory_space<vmem>>, %arg4: memref<1x256xf32, #tpu.memory_space<vmem>>, %arg5: memref<8x1024xf32, #tpu.memory_space<vmem>>, %arg6: memref<8x1xf32, #tpu.memory_space<vmem>>, %arg7: memref<8x1xf32, #tpu.memory_space<vmem>>) attributes {dimension_semantics = [#tpu.dimension_semantics<parallel>, #tpu.dimension_semantics<arbitrary>], iteration_bounds = array<i64: 1, 4>, scalar_prefetch = 0 : i64, scratch_operands = 2 : i64, tpu.core_type = #tpu.core_type<tc>, window_params = [{transform_indices = @transform_0, window_bounds = array<i64: 8, 128>}, {transform_indices = @transform_1, window_bounds = array<i64: 128, 256>}, {transform_indices = @transform_2, window_bounds = array<i64: 1, 256>}, {transform_indices = @transform_3, window_bounds = array<i64: 8, 1024>}]} {
    %c0_i32 = arith.constant 0 : i32
    %0 = arith.cmpi eq, %arg1, %c0_i32 : i32
    %1 = arith.extui %0 : i1 to i32
    %c0_i32_0 = arith.constant 0 : i32
    %2 = arith.cmpi ne, %1, %c0_i32_0 : i32
    scf.if %2 {
      %cst_18 = arith.constant 0xFF800000 : f32
      %32 = vector.broadcast %cst_18 : f32 to vector<8x1xf32>
      %c0_19 = arith.constant 0 : index
      %c0_20 = arith.constant 0 : index
      %33 = vector.load %arg6[%c0_19, %c0_20] : memref<8x1xf32, #tpu.memory_space<vmem>>, vector<8x1xf32>
      tpu.vector_store %arg6[%c0_19, %c0_20], %32 {strides = array<i32>} : memref<8x1xf32, #tpu.memory_space<vmem>>, vector<8x1xf32>,
      %cst_21 = arith.constant 0.000000e+00 : f32
      %34 = vector.broadcast %cst_21 : f32 to vector<8x1xf32>
      %c0_22 = arith.constant 0 : index
      %c0_23 = arith.constant 0 : index
      %35 = vector.load %arg7[%c0_22, %c0_23] : memref<8x1xf32, #tpu.memory_space<vmem>>, vector<8x1xf32>
      tpu.vector_store %arg7[%c0_22, %c0_23], %34 {strides = array<i32>} : memref<8x1xf32, #tpu.memory_space<vmem>>, vector<8x1xf32>,
    } else {
    }
    %c0 = arith.constant 0 : index
    %c0_1 = arith.constant 0 : index
    %3 = vector.load %arg2[%c0, %c0_1] : memref<8x128xf32, #tpu.memory_space<vmem>>, vector<8x128xf32>
    %c0_2 = arith.constant 0 : index
    %c0_3 = arith.constant 0 : index
    %4 = vector.load %arg3[%c0_2, %c0_3] : memref<128x256xf32, #tpu.memory_space<vmem>>, vector<128x256xf32>
    %cst = arith.constant dense<0.000000e+00> : vector<8x256xf32>
    %5 = tpu.matmul %3, %4, %cst {dimension_numbers = #tpu.dot_dimension_numbers<[1], [0], [0], [1], [0, 0, 1, 1], [], []>} : vector<8x128xf32>, vector<128x256xf32>, vector<8x256xf32> -> vector<8x256xf32>
    %c0_4 = arith.constant 0 : index
    %c0_5 = arith.constant 0 : index
    %6 = vector.load %arg4[%c0_4, %c0_5] : memref<1x256xf32, #tpu.memory_space<vmem>>, vector<1x256xf32>
    %7 = vector.broadcast %6 : vector<1x256xf32> to vector<8x256xf32>
    %8 = arith.addf %5, %7 : vector<8x256xf32>
    %c256_i32 = arith.constant 256 : i32
    %9 = arith.muli %arg1, %c256_i32 : i32
    %10 = tpu.assume_multiple %9, 128 : i32
    %c0_6 = arith.constant 0 : index
    %11 = arith.index_cast %10 : i32 to index
    %12 = vector.load %arg5[%c0_6, %11] : memref<8x1024xf32, #tpu.memory_space<vmem>>, vector<8x256xf32>
    tpu.vector_store %arg5[%c0_6, %11], %8 {strides = array<i32>} : memref<8x1024xf32, #tpu.memory_space<vmem>>, vector<8x256xf32>,
    %c0_7 = arith.constant 0 : index
    %c0_8 = arith.constant 0 : index
    %13 = vector.load %arg6[%c0_7, %c0_8] : memref<8x1xf32, #tpu.memory_space<vmem>>, vector<8x1xf32>
    %cst_9 = arith.constant dense<0xFF800000> : vector<8xf32>
    %14 = vector.multi_reduction <maximumf>, %8, %cst_9 [1] : vector<8x256xf32> to vector<8xf32>
    %15 = vector.shape_cast %14 : vector<8xf32> to vector<8x1xf32>
    %16 = arith.maximumf %13, %15 : vector<8x1xf32>
    %c0_10 = arith.constant 0 : index
    %c0_11 = arith.constant 0 : index
    %17 = vector.load %arg7[%c0_10, %c0_11] : memref<8x1xf32, #tpu.memory_space<vmem>>, vector<8x1xf32>
    %18 = arith.subf %13, %16 : vector<8x1xf32>
    %19 = math.exp %18 : vector<8x1xf32>
    %20 = arith.mulf %17, %19 : vector<8x1xf32>
    %21 = vector.broadcast %16 : vector<8x1xf32> to vector<8x256xf32>
    %22 = arith.subf %8, %21 : vector<8x256xf32>
    %23 = math.exp %22 : vector<8x256xf32>
    %cst_12 = arith.constant dense<0.000000e+00> : vector<8xf32>
    %24 = vector.multi_reduction <add>, %23, %cst_12 [1] : vector<8x256xf32> to vector<8xf32>
    %25 = vector.shape_cast %24 : vector<8xf32> to vector<8x1xf32>
    %26 = arith.addf %20, %25 : vector<8x1xf32>
    %c0_13 = arith.constant 0 : index
    %c0_14 = arith.constant 0 : index
    %27 = vector.load %arg7[%c0_13, %c0_14] : memref<8x1xf32, #tpu.memory_space<vmem>>, vector<8x1xf32>
    tpu.vector_store %arg7[%c0_13, %c0_14], %26 {strides = array<i32>} : memref<8x1xf32, #tpu.memory_space<vmem>>, vector<8x1xf32>,
    %c0_15 = arith.constant 0 : index
    %c0_16 = arith.constant 0 : index
    %28 = vector.load %arg6[%c0_15, %c0_16] : memref<8x1xf32, #tpu.memory_space<vmem>>, vector<8x1xf32>
    tpu.vector_store %arg6[%c0_15, %c0_16], %16 {strides = array<i32>} : memref<8x1xf32, #tpu.memory_space<vmem>>, vector<8x1xf32>,
    %c3_i32 = arith.constant 3 : i32
    %29 = arith.cmpi eq, %arg1, %c3_i32 : i32
    %30 = arith.extui %29 : i1 to i32
    %c0_i32_17 = arith.constant 0 : i32
    %31 = arith.cmpi ne, %30, %c0_i32_17 : i32
    scf.if %31 {
      %c0_18 = arith.constant 0 : index
      %c0_19 = arith.constant 0 : index
      %32 = vector.load %arg6[%c0_18, %c0_19] : memref<8x1xf32, #tpu.memory_space<vmem>>, vector<8x1xf32>
      %c0_20 = arith.constant 0 : index
      %c0_21 = arith.constant 0 : index
      %33 = vector.load %arg7[%c0_20, %c0_21] : memref<8x1xf32, #tpu.memory_space<vmem>>, vector<8x1xf32>
      %34 = math.log %33 : vector<8x1xf32>
      %35 = arith.addf %32, %34 : vector<8x1xf32>
      %c0_22 = arith.constant 0 : index
      %c0_23 = arith.constant 0 : index
      %36 = vector.load %arg5[%c0_22, %c0_23] : memref<8x1024xf32, #tpu.memory_space<vmem>>, vector<8x1024xf32>
      %37 = vector.broadcast %35 : vector<8x1xf32> to vector<8x1024xf32>
      %38 = arith.subf %36, %37 : vector<8x1024xf32>
      %c0_24 = arith.constant 0 : index
      %c0_25 = arith.constant 0 : index
      %39 = vector.load %arg5[%c0_24, %c0_25] : memref<8x1024xf32, #tpu.memory_space<vmem>>, vector<8x1024xf32>
      tpu.vector_store %arg5[%c0_24, %c0_25], %38 {strides = array<i32>} : memref<8x1024xf32, #tpu.memory_space<vmem>>, vector<8x1024xf32>,
    } else {
    }
    return
  }
  func.func @transform_0(%arg0: i32, %arg1: i32) -> (i32, i32) {
    %c0_i32 = arith.constant 0 : i32
    %c0_i32_0 = arith.constant 0 : i32
    return %arg0, %c0_i32 : i32, i32
  }
  func.func @transform_1(%arg0: i32, %arg1: i32) -> (i32, i32) {
    %c0_i32 = arith.constant 0 : i32
    %c0_i32_0 = arith.constant 0 : i32
    return %c0_i32, %arg1 : i32, i32
  }
  func.func @transform_2(%arg0: i32, %arg1: i32) -> (i32, i32) {
    %c0_i32 = arith.constant 0 : i32
    %c0_i32_0 = arith.constant 0 : i32
    return %c0_i32, %arg1 : i32, i32
  }
  func.func @transform_3(%arg0: i32, %arg1: i32) -> (i32, i32) {
    %c0_i32 = arith.constant 0 : i32
    %c0_i32_0 = arith.constant 0 : i32
    return %arg0, %c0_i32 : i32, i32
  }
}

</mosaic_0001>

<bundles_post_ra>
// kernel: cbow_forward.1
= control target key start
LH: loop header
LB: loop body
LE: loop exit
PB: predicated region body
PF: predicated region fallthrough
CT: control target
= control target key end

     0   :  { %8 = vsyncpa [#allocation5], 0  ;;  %s1002_s0 = inlined_call_operand.vmem [shape: f32[8,128], index: 0, kind: input, shape index: {}]   ;;  %s1003_s1 = inlined_call_operand.hbm [shape: f32[128,1024], index: 1, kind: input, shape index: {}]   ;;  %s1004_s2 = inlined_call_operand.vmem [shape: f32[1,1024], index: 2, kind: input, shape index: {}]   ;;  %s1005_s3 = inlined_call_operand.hbm [shape: f32[8,1024], index: 3, kind: output, shape index: {}]  }
   0x1   :  { %10 = vsyncpa [#allocation5 + $0x1], 0 }
   0x2   :  { %11 = vsyncpa [#allocation6], 0  ;;  %s797_s12 = smov 0   ;;  %s799_s13 = smov 0  }
   0x3   :  { %s801_s14 = smov 0   ;;  %s803_s15 = smov 0  }
   0x4   :  { %s805_s16 = smov 0   ;;  %s807_s17 = smov 0  }
   0x5 LB: > { %s524_s18 = sadd.s32 4294967295, %s765_s17   ;;  %s26_s19 = sadd.s32 1, %s761_s16  ;;  %s765_s17 = sphi %s807_s17, %s17_s17   ;;  %s761_s16 = sphi %s805_s16, %s1015_s16   ;;  %s757_s15 = sphi %s803_s15, %s1014_s15   ;;  %s753_s14 = sphi %s801_s14, %s1013_s14   ;;  %s749_s13 = sphi %s799_s13, %s1012_s13   ;;  %s745_s12 = sphi %s797_s12, %s1011_s12  }
   0x6   : > { %p27_p0 = scmp.ge.s32.totalorder %s26_s19, 4  ;;  %s62_s20 = sadd.s32 1, %s753_s14 }
   0x7   : > { %p69_p1 = scmp.ne.s32.totalorder %s753_s14, %s749_s13  ;;  %p70_p2 = scmp.eq.s32.totalorder %s765_s17, 0 }
   0x8   : > { %s1017_s19 = smov (%p27_p0, %s26_s19), 0  ;;  %p75_p4 = scmp.ne.s32.totalorder %s749_s13, %s745_s12 }
   0x9   : > { %p833_p3 = por %p70_p2, %p69_p1  ;;  %s59_s22 = ssub.s32 %s761_s16, %s1017_s19 }
   0xa   : > { %p76_p5 = scmp.eq.s32.totalorder %s524_s18, 0  ;;  %p60_p6 = scmp.eq.s32.totalorder %s59_s22, 0 }
   0xb   : > { %p585_p8 = scmp.lt.s32.totalorder %s765_s17, 4  ;;  %s158_s25 = sand.u32 1, %s753_s14  }
   0xc   : > { %p842_p7 = por %p76_p5, %p75_p4  ;;  %s542_s26 = sshll.u32 %s761_s16, 8 }
   0xd   : > { %s848_s24 = scalar_select %p60_p6, %s753_s14, %s62_s20  }
   0xe   : > { %s528_s27 = sshll.u32 %s158_s25, 8  ;;  %s855_s30 = scalar_lea.hbm %s1003_s1, %s542_s26 }
   0xf   : > { %s162_s4 = scalar_lea.vmem [#allocation4], %s528_s27  ;;  %p859_p9 = pnand %p585_p8, %p833_p3 }
  0x10   : > { %s169_s5 = sshll.u32 %s162_s4, 4  ;;  %s866_s7 = scalar_lea.sflag [#allocation5], %s158_s25  ;;  %s863_s5 = int_to_ptr.vmem [resolvable:$true] %s169_s5 }
  0x11   : > { %s655_s8 = scalar_lea.hbm %s855_s30, 4096  ;;  %p657_p12 = pneg %p859_p9 }
  0x12   : > { %p656_p11 = scmp.ne.s32.totalorder %s855_s30, %s655_s8  ;;  %s660_s11 = scalar_lea.hbm %s1003_s1, 16384 }
  0x13   : > { %p661_p1 = scmp.lt.u32.totalorder %s855_s30, %s1003_s1  ;;  %p662_p2 = scmp.lt.u32.totalorder %s660_s11, %s655_s8 }
  0x14   : > { %p658_p13 = pnand %p657_p12, %p656_p11  ;;  %p664_p4 = scmp.lt.u32.totalorder %s655_s8, %s855_s30 }
  0x15   : > { %p663_p3 = por %p662_p2, %p661_p1 }
  0x16   : > { %p659_p0 = pneg %p658_p13 }
  0x17   : > { %p665_p5 = por %p664_p4, %p663_p3 }
  0x19   : > { %p666_p6 = pnand %p665_p5, %p659_p0 }
  0x1b   : > { %669 = shalt.err (!%p666_p6)
}
  0x1c   : > { %s670_s21 = scalar_lea.vmem %s863_s5, 4096  ;;  %s767_s22 = smov [#allocation4]  }
  0x1d   : > { %p671_p8 = scmp.ne.s32.totalorder %s863_s5, %s670_s21  ;;  %s675_s25 = sshll.u32 %s767_s22, 4  ;;  %s676_s25 = int_to_ptr.vmem [resolvable:$false] %s675_s25 }
  0x1e   : > { %s677_s26 = scalar_lea.vmem %s676_s25, 8192  ;;  %p678_p10 = scmp.lt.s32.totalorder %s863_s5, %s676_s25 }
  0x1f   : > { %p673_p11 = pnand %p671_p8, %p657_p12  ;;  %p679_p1 = scmp.lt.s32.totalorder %s677_s26, %s670_s21 }
  0x21   : > { %p674_p13 = pneg %p673_p11  ;;  %p680_p2 = por %p679_p1, %p678_p10 }
  0x23   : > { %p681_p3 = pnand %p680_p2, %p674_p13 }
  0x25   : > { %684 = shalt.err (!%p681_p3)
}
  0x26   : > { %s768_s27 = smov 1024   ;;  %s769_s28 = smov 256  }
  0x27   : > { %s770_s29 = smov 16   ;;  %p185_p12 = scmp.lt.s32.totalorder %s765_s17, 5 }
  0x28   : > { %584 = dma.hbm_to_vmem [thread:$0]  (!%p859_p9), %s855_s30, 4096, %s863_s5, %s866_s7, %s768_s27, %s769_s28, %s770_s29  }
  0x29   : > { %p1009_p0 = scmp.ge.s32.totalorder %s765_s17, 1 }
  0x2b   : > { %p186_p4 = pnand %p1009_p0, %p185_p12 }
  0x2c   : > { %s191_s4 = sand.u32 (!%p186_p4), 1, %s749_s13  }
  0x2d   : > { %189 = sbr.rel (%p186_p4) target bundleno = 930 (0x3a2), region = 32  ;;  %s532_s8 = sshll.u32 (!%p186_p4), %s191_s4, 8 }
  0x2e   : > { %s192_s9 = scalar_lea.sflag (!%p186_p4), [#allocation5], %s191_s4  ;;  %s898_s10 = scalar_lea.vmem (!%p186_p4), [#allocation4], %s532_s8 }
  0x34   : > { %736 = dma.done.wait (%p842_p7), %s192_s9, 4096  }
  0x35   : > { %738 = vsyncadd (%p842_p7), %s192_s9, 4294963200  ;;  %s533_s11 = sshll.u32 %s757_s15, 1  ;;  %p534_p9 = scmp.ne.s32.totalorder %s757_s15, 0 }
  0x36   : > { %p227_p10 = scmp.lt.s32.totalorder %s533_s11, 7  ;;  %vm235_vm0 = vcmask (!%p534_p9), 7168   ;;  %v771_v0 = vmov (!%p534_p9), -inf   ;;  %v772_v1 = vmov (!%p534_p9), 0.0  }
  0x37   : > { %234 = sbr.rel (%p534_p9) target bundleno = 62 (0x3e), region = 40  ;;  %236 = vst.msk [vmem:[#allocation2] sm:$0xff] (!%p534_p9), %vm235_vm0, %v771_v0  ;;  %237 = vst.msk [vmem:[#allocation3] sm:$0xff] (!%p534_p9), %vm235_vm0, %v772_v1 }
  0x38   : > { %s1019_s11 = smov (!%p227_p10, %s533_s11), 7 }
  0x39   : > { %s229_s6 = scalar_lea.vmem %s1004_s2, %s1019_s11 }
  0x3e PF: > { %v240_v2 = vld [vmem:[%s898_s10 + $0x8] sm:$0xff]  ;;  %v242_v3 = vld [vmem:[%s898_s10 + $0x18] sm:$0xff]  ;;  %v239_v4 = vld [vmem:[%s898_s10] sm:$0xff]  ;;  %v773_v9 = vmov 0.0   ;;  %v273_v52 = vlaneseq  ;;  %s535_s12 = sshll.u32 %s757_s15, 8  ;;  %v774_v0 = vmov 0  }
  0x3f   : > { %v543_v5 = vpack.c.bf16 %v242_v3, %v240_v2  ;;  %v241_v6 = vld [vmem:[%s898_s10 + $0x10] sm:$0xff]  ;;  %v244_v7 = vld [vmem:[%s898_s10 + $0x28] sm:$0xff]  ;;  %v246_v8 = vld [vmem:[%s898_s10 + $0x38] sm:$0xff]  ;;  %347 = vmatprep.mubr.f32.mxu0 %v773_v9  ;;  %s355_s22 = sshra.s32 %s535_s12, 7  ;;  %645 = vset.pattern.permute.xlu0 %v774_v0  ;;  %vm386_vm1 = vcmask 7168   ;;  %p537_p7 = scmp.ne.s32.totalorder %s757_s15, 3 }
  0x40   : > { %v545_v10 = vpack.c.bf16 %v241_v6, %v239_v4  ;;  %v547_v11 = vpack.c.bf16 %v246_v8, %v244_v7  ;;  %v243_v12 = vld [vmem:[%s898_s10 + $0x20] sm:$0xff]  ;;  %v245_v13 = vld [vmem:[%s898_s10 + $0x30] sm:$0xff]  ;;  %v248_v14 = vld [vmem:[%s898_s10 + $0x48] sm:$0xff]  ;;  %v274_v53 = vshrl.u32 %v273_v52, 7  ;;  %s536_s25 = sshll.u32 %s355_s22, 3 }
  0x41   : > { %544 = vmatprep.subr.bf16.mxu0 %v543_v5  ;;  %v250_v15 = vld [vmem:[%s898_s10 + $0x58] sm:$0xff]  ;;  %v549_v16 = vpack.c.bf16 %v245_v13, %v243_v12  ;;  %v247_v18 = vld [vmem:[%s898_s10 + $0x40] sm:$0xff]  ;;  %v249_v19 = vld [vmem:[%s898_s10 + $0x50] sm:$0xff]  ;;  %s358_s26 = scalar_lea.vmem [#allocation7], %s536_s25 }
  0x42   : > { %546 = vmatpush1.bf16.msra.mxu0 %v545_v10  ;;  %v551_v17 = vpack.c.bf16 %v250_v15, %v248_v14  ;;  %v252_v20 = vld [vmem:[%s898_s10 + $0x68] sm:$0xff]  ;;  %v254_v21 = vld [vmem:[%s898_s10 + $0x78] sm:$0xff]  ;;  %v553_v22 = vpack.c.bf16 %v249_v19, %v247_v18  ;;  %v251_v24 = vld [vmem:[%s898_s10 + $0x60] sm:$0xff]  ;;  %v275_v54 = vsub.s32 0, %v274_v53  ;;  %v279_v56 = vsub.s32 1, %v274_v53 }
  0x43   : > { %548 = vmatprep.subr.bf16.mxu0 %v547_v11  ;;  %v555_v23 = vpack.c.bf16 %v254_v21, %v252_v20  ;;  %v253_v25 = vld [vmem:[%s898_s10 + $0x70] sm:$0xff]  ;;  %v256_v26 = vld [vmem:[%s898_s10 + $0x88] sm:$0xff]  ;;  %v258_v27 = vld [vmem:[%s898_s10 + $0x98] sm:$0xff]  ;;  %v775_v20 = vmov (!%p537_p7), 0  }
  0x44   : > { %v557_v28 = vpack.c.bf16 %v253_v25, %v251_v24  ;;  %v559_v29 = vpack.c.bf16 %v258_v27, %v256_v26  ;;  %v255_v30 = vld [vmem:[%s898_s10 + $0x80] sm:$0xff]  ;;  %v257_v31 = vld [vmem:[%s898_s10 + $0x90] sm:$0xff]  ;;  %v260_v32 = vld [vmem:[%s898_s10 + $0xa8] sm:$0xff] }
  0x45   : > { %v262_v33 = vld [vmem:[%s898_s10 + $0xb8] sm:$0xff]  ;;  %v561_v34 = vpack.c.bf16 %v257_v31, %v255_v30  ;;  %v259_v36 = vld [vmem:[%s898_s10 + $0xa0] sm:$0xff]  ;;  %v261_v37 = vld [vmem:[%s898_s10 + $0xb0] sm:$0xff] }
  0x46   : > { %550 = vmatpush1.bf16.msra.mxu0 %v549_v16  ;;  %v563_v35 = vpack.c.bf16 %v262_v33, %v260_v32  ;;  %v264_v38 = vld [vmem:[%s898_s10 + $0xc8] sm:$0xff]  ;;  %v266_v39 = vld [vmem:[%s898_s10 + $0xd8] sm:$0xff]  ;;  %v565_v40 = vpack.c.bf16 %v261_v37, %v259_v36  ;;  %v263_v42 = vld [vmem:[%s898_s10 + $0xc0] sm:$0xff] }
  0x47   : > { %552 = vmatprep.subr.bf16.mxu0 %v551_v17  ;;  %v567_v41 = vpack.c.bf16 %v266_v39, %v264_v38  ;;  %v265_v43 = vld [vmem:[%s898_s10 + $0xd0] sm:$0xff]  ;;  %v268_v44 = vld [vmem:[%s898_s10 + $0xe8] sm:$0xff]  ;;  %v270_v45 = vld [vmem:[%s898_s10 + $0xf8] sm:$0xff] }
  0x48   : > { %v569_v46 = vpack.c.bf16 %v265_v43, %v263_v42  ;;  %v571_v47 = vpack.c.bf16 %v270_v45, %v268_v44  ;;  %v267_v48 = vld [vmem:[%s898_s10 + $0xe0] sm:$0xff]  ;;  %v269_v49 = vld [vmem:[%s898_s10 + $0xf0] sm:$0xff]  ;;  %v366_v15 = vld [vmem:[#allocation3] sm:$0xff] }
  0x49   : > { %v573_v50 = vpack.c.bf16 %v269_v49, %v267_v48  ;;  %v238_v51 = vld [vmem:[%s1002_s0] sm:$0xff] }
  0x4a   : > { %554 = vmatpush1.bf16.msra.mxu0 %v553_v22  ;;  %v271_v55 = vld [vmem:[%s229_s6] sm:$0x3] }
  0x4b   : > { %556 = vmatprep.subr.bf16.mxu0 %v555_v23  ;;  %v276_v57 = vrot.slane %v271_v55, %v275_v54  ;;  %v280_v58 = vrot.slane %v271_v55, %v279_v56  ;;  %v361_v1 = vld [vmem:[#allocation2] sm:$0xff] }
  0x4e   : > { %558 = vmatpush1.bf16.msra.mxu0 %v557_v28 }
  0x4f   : > { %560 = vmatprep.subr.bf16.mxu0 %v559_v29 }
  0x52   : > { %562 = vmatpush1.bf16.msra.mxu0 %v561_v34 }
  0x53   : > { %564 = vmatprep.subr.bf16.mxu0 %v563_v35 }
  0x56   : > { %566 = vmatpush1.bf16.msra.mxu0 %v565_v40 }
  0x57   : > { %568 = vmatprep.subr.bf16.mxu0 %v567_v41 }
  0x5a   : > { %570 = vmatpush1.bf16.msra.mxu0 %v569_v46 }
  0x5b   : > { %572 = vmatprep.subr.bf16.mxu0 %v571_v47 }
  0x5e   : > { %574 = vmatpush1.bf16.msra.mxu0 %v573_v50 }
  0x61   : > { %348 = vmatmul.mubr.f32.vlgmr.msra.gmra.mrb[0].mxu0 %v238_v51 }
 0x134   : > { %v349_v59 = vpop.f32.mrb[0].mxu0 }
 0x135   : > { %v350_v60 = vadd.f32 %v349_v59, %v276_v57  ;;  %v351_v61 = vpop.f32.mrb[1].mxu0 }
 0x136   : > { %v352_v62 = vadd.f32 %v351_v61, %v280_v58 }
 0x137   : > { %359 = vst [vmem:[%s358_s26] sm:$0xff] %v350_v60 }
 0x138   : > { %360 = vst [vmem:[%s358_s26 + $0x8] sm:$0xff] %v352_v62  ;;  %v362_v63 = vmax.f32 %v350_v60, %v352_v62 }
 0x13a   : > { %363 = vmax.xlane.f32.xlu0 %v362_v63 }
 0x13f   : > { %v398_v25 = vld [vmem:[#allocation7] sm:$0xff] (!%p537_p7)  ;;  %v399_v26 = vld [vmem:[#allocation7 + $0x8] sm:$0xff] (!%p537_p7)  ;;  %v400_v27 = vld [vmem:[#allocation7 + $0x10] sm:$0xff] (!%p537_p7) }
 0x140   : > { %v401_v28 = vld [vmem:[#allocation7 + $0x18] sm:$0xff] (!%p537_p7)  ;;  %v402_v29 = vld [vmem:[#allocation7 + $0x20] sm:$0xff] (!%p537_p7)  ;;  %v403_v30 = vld [vmem:[#allocation7 + $0x28] sm:$0xff] (!%p537_p7) }
 0x141   : > { %v404_v31 = vld [vmem:[#allocation7 + $0x30] sm:$0xff] (!%p537_p7)  ;;  %v405_v32 = vld [vmem:[#allocation7 + $0x38] sm:$0xff] (!%p537_p7) }
 0x1c7   : > { %v364_v2 = vpop.xlane.xlu0 %363 }
 0x1c8   : > { %v365_v3 = vmax.f32 %v361_v1, %v364_v2 }
 0x1ca   : > { %v367_v4 = vsub.f32 %v361_v1, %v365_v3  ;;  %388 = vst.msk [vmem:[#allocation2] sm:$0xff] %vm386_vm1, %v365_v3  ;;  %373 = vperm.xlu0 %645, %v365_v3  }
 0x1cc   : > { %v368_v13 = vmul.f32 1.442695, %v367_v4 }
 0x1ce   : > { %652 = vset.pattern.permute.xlu0 (!%p537_p7), %v775_v20 }
 0x1d1   : > { %v393_v22 = vld [vmem:[#allocation2] sm:$0xff] (!%p537_p7) }
 0x249   : > { %v374_v5 = vpop.permute.xlu0 %373 }
 0x24a   : > { %v376_v6 = vsub.f32 %v350_v60, %v374_v5  ;;  %v377_v7 = vsub.f32 %v352_v62, %v374_v5 }
 0x24c   : > { %v378_v8 = vmul.f32 1.442695, %v376_v6  ;;  %v380_v9 = vmul.f32 1.442695, %v377_v7 }
 0x24e   : > { %646 = vpow2.f32 %v378_v8 }
 0x24f   : > { %648 = vpow2.f32 %v380_v9 }
 0x250   : > { %650 = vpow2.f32 %v368_v13 }
 0x258   : > { %v647_v10 = vpop.eup %646 }
 0x259   : > { %v649_v11 = vpop.eup %648 }
 0x25a   : > { %v382_v12 = vadd.f32 %v649_v11, %v647_v10  ;;  %v651_v14 = vpop.eup %650 }
 0x25b   : > { %v370_v16 = vmul.f32 %v651_v14, %v366_v15 }
 0x25c   : > { %383 = vadd.xlane.f32.xlu1 %v382_v12 }
 0x2e6   : > { %392 = sbr.rel (%p537_p7) target bundleno = 905 (0x389), region = 44 }
 0x2e9   : > { %v384_v17 = vpop.xlane.xlu1 %383 }
 0x2ea   : > { %v385_v18 = vadd.f32 %v384_v17, %v370_v16 }
 0x2ec   : > { %387 = vst.msk [vmem:[#allocation3] sm:$0xff] %vm386_vm1, %v385_v18 }
 0x2f3   : > { %v394_v19 = vld [vmem:[#allocation3] sm:$0xff] }
 0x2f4   : > { %653 = vlog2.f32 %v394_v19 }
 0x2fe   : > { %v654_v21 = vpop.eup %653 }
 0x2ff   : > { %v396_v23 = vmul.f32 0.6931472, %v654_v21 }
 0x301   : > { %v397_v24 = vadd.f32 %v396_v23, %v393_v22 }
 0x303   : > { %408 = vperm.xlu0 %652, %v397_v24  }
 0x382   : > { %v409_v33 = vpop.permute.xlu0 %408 }
 0x383   : > { %v411_v34 = vsub.f32 %v398_v25, %v409_v33  ;;  %v412_v35 = vsub.f32 %v399_v26, %v409_v33  ;;  %v413_v36 = vsub.f32 %v400_v27, %v409_v33  ;;  %v414_v37 = vsub.f32 %v401_v28, %v409_v33 }
 0x384   : > { %v415_v38 = vsub.f32 %v402_v29, %v409_v33  ;;  %v416_v39 = vsub.f32 %v403_v30, %v409_v33  ;;  %v417_v40 = vsub.f32 %v404_v31, %v409_v33  ;;  %v418_v41 = vsub.f32 %v405_v32, %v409_v33 }
 0x385   : > { %419 = vst [vmem:[#allocation7] sm:$0xff] %v411_v34  ;;  %420 = vst [vmem:[#allocation7 + $0x8] sm:$0xff] %v412_v35 }
 0x386   : > { %421 = vst [vmem:[#allocation7 + $0x10] sm:$0xff] %v413_v36  ;;  %422 = vst [vmem:[#allocation7 + $0x18] sm:$0xff] %v414_v37 }
 0x387   : > { %423 = vst [vmem:[#allocation7 + $0x20] sm:$0xff] %v415_v38  ;;  %424 = vst [vmem:[#allocation7 + $0x28] sm:$0xff] %v416_v39 }
 0x388   : > { %425 = vst [vmem:[#allocation7 + $0x30] sm:$0xff] %v417_v40  ;;  %426 = vst [vmem:[#allocation7 + $0x38] sm:$0xff] %v418_v41 }
 0x389 PF: > { %p958_p5 = scmp.eq.s32.totalorder %s524_s18, 3  ;;  %s776_s27 = smov [#allocation7]  }
 0x38a   : > { %s437_s28 = sshll.u32 %s776_s27, 4  ;;  %s438_s28 = int_to_ptr.vmem [resolvable:$true] %s437_s28 }
 0x38b   : > { %s685_s29 = scalar_lea.vmem %s438_s28, 1024  ;;  %p692_p13 = scmp.lt.s32.totalorder %s438_s28, %s438_s28 }
 0x38c   : > { %p686_p6 = scmp.ne.s32.totalorder %s438_s28, %s685_s29  ;;  %p693_p1 = scmp.lt.s32.totalorder %s685_s29, %s685_s29 }
 0x38e   : > { %p687_p8 = pnand %p686_p6, %p958_p5  ;;  %p694_p2 = por %p693_p1, %p692_p13 }
 0x390   : > { %p688_p11 = pneg %p687_p8 }
 0x392   : > { %p695_p3 = pnand %p694_p2, %p688_p11 }
 0x394   : > { %698 = shalt.err (!%p695_p3)
}
 0x395   : > { %s699_s18 = scalar_lea.hbm %s1005_s3, 1024 }
 0x396   : > { %p700_p12 = scmp.ne.s32.totalorder %s1005_s3, %s699_s18  ;;  %p705_p10 = scmp.lt.u32.totalorder %s699_s18, %s1005_s3 }
 0x398   : > { %p701_p0 = pnand %p700_p12, %p958_p5 }
 0x39a   : > { %p702_p4 = pneg %p701_p0 }
 0x39c   : > { %p707_p9 = pnand %p705_p10, %p702_p4 }
 0x39e   : > { %710 = shalt.err (!%p707_p9)
}
 0x39f   : > { %578 = dma.vmem_to_hbm [thread:$0]  (%p958_p5), %s438_s28, 1024, %s1005_s3, [#allocation6]  }
 0x3a0   : > { %740 = dma.done.wait (%p958_p5), [#allocation6], 1024  }
 0x3a1   : > { %742 = vsyncadd (%p958_p5), [#allocation6], 4294966272 }
 0x3a2 PF: > { %s17_s17 = sadd.s32 1, %s765_s17   ;;  %s1011_s12 = smov %s749_s13 }
 0x3a3   : > { %p14_p7 = scmp.ge.s32.totalorder %s17_s17, 6   ;;  %s1012_s13 = smov %s753_s14 }
 0x3a4   : > { %s1013_s14 = smov %s848_s24  ;;  %s1014_s15 = smov %s761_s16 }
 0x3a5   : > { %s1015_s16 = smov %s1017_s19  ;;  %16 = sbr.rel (!%p14_p7) target bundleno = 5 (0x5), region = 85 }
 0x3ac   :  { %450 = vsyncpa [#allocation5], 1 }
 0x3ad   :  { %452 = vsyncpa [#allocation5 + $0x1], 1 }
 0x3ae   :  { %453 = vsyncpa [#allocation6], 1 }
 0x3af   :  { %455 = vsyncpa [#allocation6 + $0x1], 1 }

</bundles_post_ra>
